<compile_context>
chip_gen: v7x
topology: tpu7x:2x2x1
jax: 0.10.0
libtpu: 0.0.40
codegen_flags: <defaults>
</compile_context>

<pallas_src>
import jax
import jax.numpy as jnp
from jax.experimental import pallas as pl
from jax.experimental.pallas import tpu as pltpu


def _round_up(n, m):
    return ((n + m - 1) // m) * m


def stacked_gru_kernel(x0_ref, h0_ref, wih0_ref, slab_ref, h1_ref, x_scr, gi_scr):
    """One grid step == one GRUCell layer.

    Blocks:
      x0_ref   [B, Ip]            layer-0 external input, zero-padded (resident)
      h0_ref   [1, B, Hp]         previous hidden state of this layer
      wih0_ref [Ip, 3*Hp]         layer-0 input->gates weights (resident, fetched once)
      slab_ref [1, 2*Hp+8, 3*Hp]  per-layer slab: rows [0,Hp)   = W_ih (layers >= 1)
                                                   rows [Hp,2Hp) = W_hh
                                                   row  2Hp      = b_ih+b_hh (r,z), b_in (n)
                                                   row  2Hp+1    = b_hn (n cols only)
      h1_ref   [1, B, Hp]         new hidden state of this layer (output)
      x_scr    [B, Hp]            previous layer's hidden, carried in VMEM (f32)
      gi_scr   [B, 3*Hp]          input->gates pre-activation scratch (f32)
    """
    l = pl.program_id(0)
    B = h0_ref.shape[1]
    Hp = h0_ref.shape[2]
    wdt = slab_ref.dtype

    # Input->gates matmul.  Layer 0 consumes the external (padded) input with its own
    # resident weight; layers >= 1 consume the previous layer's hidden from x_scr.
    @pl.when(l == 0)
    def _():
        gi_scr[...] = jnp.dot(x0_ref[...].astype(wih0_ref.dtype), wih0_ref[...],
                              preferred_element_type=jnp.float32)

    @pl.when(l > 0)
    def _():
        gi_scr[...] = jnp.dot(x_scr[...].astype(wdt), slab_ref[0, :Hp, :],
                              preferred_element_type=jnp.float32)

    h = h0_ref[0]  # [B, Hp], f32 activations

    # Hidden->gates matmul (lane-dense, gates r|z|n concatenated on the lane axis).
    gh = jnp.dot(h.astype(wdt), slab_ref[0, Hp:2 * Hp, :],
                 preferred_element_type=jnp.float32)

    # Bias rows (loaded together: aligned 2-row slice).
    b2 = slab_ref[0, 2 * Hp:2 * Hp + 2, :].astype(jnp.float32)   # [2, 3Hp]
    bi = b2[0:1, :]                                              # (b_ih+b_hh | b_in)
    bhn = b2[1:2, 2 * Hp:]                                       # b_hn

    gi = gi_scr[...] + bi

    # PyTorch GRUCell semantics (gate order r, z, n; r applied only to hidden contrib of n).
    r = jax.nn.sigmoid(gi[:, :Hp] + gh[:, :Hp])
    z = jax.nn.sigmoid(gi[:, Hp:2 * Hp] + gh[:, Hp:2 * Hp])
    n = jnp.tanh(gi[:, 2 * Hp:] + r * (gh[:, 2 * Hp:] + bhn))
    h_new = (1.0 - z) * n + z * h.astype(jnp.float32)

    h1_ref[0] = h_new.astype(h1_ref.dtype)
    # Feed the next layer (inter-layer dropout is identity here).  Padded hidden lanes
    # stay exactly zero because h0 is zero-padded and padded weight/bias lanes are zero.
    x_scr[...] = h_new.astype(x_scr.dtype)


def init_stacked_gru_params(key, num_layers, input_size, rnn_size, dtype=jnp.float32):
    """nn.GRUCell-style init U(-1/sqrt(H), 1/sqrt(H)).  Weights stored pre-transposed
    with gates concatenated on the last axis: w_ih [in, 3H], w_hh [H, 3H], b [3H]."""
    params = []
    bound = 1.0 / (rnn_size ** 0.5)
    in_dim = input_size
    for _ in range(num_layers):
        key, k1, k2, k3, k4 = jax.random.split(key, 5)
        w_ih = jax.random.uniform(k1, (in_dim, 3 * rnn_size), dtype, -bound, bound)
        w_hh = jax.random.uniform(k2, (rnn_size, 3 * rnn_size), dtype, -bound, bound)
        b_ih = jax.random.uniform(k3, (3 * rnn_size,), dtype, -bound, bound)
        b_hh = jax.random.uniform(k4, (3 * rnn_size,), dtype, -bound, bound)
        params.append((w_ih, w_hh, b_ih, b_hh))
        in_dim = rnn_size
    return params


def pack_stacked_gru_params(params, input_size, rnn_size,
                            weight_dtype=jnp.bfloat16, lane=128):
    """Pack params ONCE into:
         wih0 [Ip, 3*Hp]           layer-0 input weights (lane/row padded)
         slab [L, 2*Hp+8, 3*Hp]    per-layer merged slab (W_ih | W_hh | bias rows)
       Gate order is r, z, n; each gate occupies a 128-aligned [*, Hp] lane block.
       Biases for r,z are pre-summed (b_ih+b_hh); the n gate keeps b_in / b_hn separate.
       Layer 0's W_ih region inside the slab is zero (its input weights live in wih0)."""
    L = len(params)
    H = rnn_size
    Hp = _round_up(H, lane)
    Ip = _round_up(input_size, lane)
    rows = 2 * Hp + 8  # sublane-aligned row count

    wih0 = jnp.zeros((Ip, 3 * Hp), jnp.float32)
    slab = jnp.zeros((L, rows, 3 * Hp), jnp.float32)
    for l, (w_ih, w_hh, b_ih, b_hh) in enumerate(params):
        in_dim = w_ih.shape[0]
        w_ih = w_ih.astype(jnp.float32)
        w_hh = w_hh.astype(jnp.float32)
        b_ih = b_ih.astype(jnp.float32)
        b_hh = b_hh.astype(jnp.float32)
        for g in range(3):  # gate order r, z, n
            src = slice(g * H, (g + 1) * H)
            dst = slice(g * Hp, g * Hp + H)
            if l == 0:
                wih0 = wih0.at[:in_dim, dst].set(w_ih[:, src])
            else:
                slab = slab.at[l, :in_dim, dst].set(w_ih[:, src])
            slab = slab.at[l, Hp:Hp + H, dst].set(w_hh[:, src])
            if g < 2:  # r, z: biases always add together -> pre-sum
                slab = slab.at[l, 2 * Hp, dst].set(b_ih[src] + b_hh[src])
            else:      # n: b_in added to gi, b_hn stays inside r*(...)
                slab = slab.at[l, 2 * Hp, dst].set(b_ih[src])
                slab = slab.at[l, 2 * Hp + 1, dst].set(b_hh[src])
    return dict(wih0=wih0.astype(weight_dtype), slab=slab.astype(weight_dtype),
                L=L, H=H, Hp=Hp, Ip=Ip, rows=rows, input_size=input_size)


def stacked_gru_forward(packed, input_feed, hidden):
    """Mirrors StackedGRU.forward.

    input_feed: [B, input_size]
    hidden: ([num_layers, B, rnn_size],)
    returns (output [B, rnn_size], (h_1 [num_layers, B, rnn_size],))
    """
    (h0,) = hidden
    L, H, Hp, Ip, rows = (packed["L"], packed["H"], packed["Hp"],
                          packed["Ip"], packed["rows"])
    B, I = input_feed.shape
    act_dtype = input_feed.dtype  # activations stay f32; cast to weight dtype only at dots

    x_pad = jnp.zeros((B, Ip), act_dtype).at[:, :I].set(input_feed)
    h0_pad = jnp.zeros((L, B, Hp), act_dtype).at[:, :, :H].set(h0)  # zero-pad invariant!

    # VMEM budget: double-buffered weight slab + resident layer-0 weights + activation
    # blocks + scratch (f32).  Capped at 64 MiB so it stays legal on v7x as well.
    wb = jnp.dtype(packed["slab"].dtype).itemsize
    ab = jnp.dtype(act_dtype).itemsize
    needed = (2 * rows * 3 * Hp * wb          # double-buffered per-layer slab
              + 2 * Ip * 3 * Hp * wb          # layer-0 W_ih (resident)
              + 2 * B * Ip * ab               # x0 block
              + 4 * B * Hp * ab               # h0 / h1 blocks (double-buffered)
              + B * Hp * 4 + B * 3 * Hp * 4)  # x_scr + gi_scr scratch
    vmem_limit = int(min(max(2 * needed, 16 << 20), 64 << 20))

    h1_pad = pl.pallas_call(
        stacked_gru_kernel,
        out_shape=jax.ShapeDtypeStruct((L, B, Hp), act_dtype),
        grid_spec=pltpu.PrefetchScalarGridSpec(
            num_scalar_prefetch=0,
            grid=(L,),
            in_specs=[
                pl.BlockSpec((B, Ip), lambda l: (0, 0)),              # layer-0 input (resident)
                pl.BlockSpec((1, B, Hp), lambda l: (l, 0, 0)),        # h0 per layer
                pl.BlockSpec((Ip, 3 * Hp), lambda l: (0, 0)),         # layer-0 W_ih (resident)
                pl.BlockSpec((1, rows, 3 * Hp), lambda l: (l, 0, 0)), # merged per-layer slab
            ],
            out_specs=pl.BlockSpec((1, B, Hp), lambda l: (l, 0, 0)),
            scratch_shapes=[pltpu.VMEM((B, Hp), act_dtype),           # carried activation
                            pltpu.VMEM((B, 3 * Hp), jnp.float32)],    # gi pre-activation
        ),
        compiler_params=pltpu.CompilerParams(
            # Layers are sequential (activation carried in scratch) -> "arbitrary".
            dimension_semantics=("arbitrary",),
            vmem_limit_bytes=vmem_limit,
        ),
    )(x_pad, h0_pad, packed["wih0"], packed["slab"])

    h_1 = h1_pad[:, :, :H]
    output = h_1[-1]  # no dropout after the last layer (matches the module)
    return output, (h_1,)


def _reference_forward(params, input_feed, hidden, weight_dtype=jnp.float32):
    """Pure-JAX reference of the same math (weights quantized to weight_dtype)."""
    (h_stack,) = hidden
    H = h_stack.shape[-1]
    x = input_feed
    outs = []
    hi = jax.lax.Precision.HIGHEST
    for i, (w_ih, w_hh, b_ih, b_hh) in enumerate(params):
        h = h_stack[i]
        wi = w_ih.astype(weight_dtype)
        wh = w_hh.astype(weight_dtype)
        gi = (jnp.dot(x.astype(weight_dtype), wi,
                      preferred_element_type=jnp.float32, precision=hi)
              + b_ih.astype(weight_dtype).astype(jnp.float32))
        gh = (jnp.dot(h.astype(weight_dtype), wh,
                      preferred_element_type=jnp.float32, precision=hi)
              + b_hh.astype(weight_dtype).astype(jnp.float32))
        r = jax.nn.sigmoid(gi[:, :H] + gh[:, :H])
        z = jax.nn.sigmoid(gi[:, H:2 * H] + gh[:, H:2 * H])
        n = jnp.tanh(gi[:, 2 * H:] + r * gh[:, 2 * H:])
        h_new = (1.0 - z) * n + z * h
        x = h_new
        outs.append(h_new)
    return x, (jnp.stack(outs, 0),)


if __name__ == "__main__":
    num_layers = 3
    input_size = 48   # > rnn_size, as in an input-feeding decoder (emb + rnn)
    rnn_size = 32
    batch = 8
    dropout = 0.0     # identity (see TODO above)

    key = jax.random.PRNGKey(0)
    key, kp, kx, kh = jax.random.split(key, 4)
    params = init_stacked_gru_params(kp, num_layers, input_size, rnn_size)

    input_feed = jax.random.normal(kx, (batch, input_size), jnp.float32)
    h0 = jax.random.normal(kh, (num_layers, batch, rnn_size), jnp.float32)
    hidden = (h0,)

    # --- f32 weights: tight correctness check ---------------------------------
    packed32 = pack_stacked_gru_params(params, input_size, rnn_size,
                                       weight_dtype=jnp.float32)
    out32, (h1_32,) = stacked_gru_forward(packed32, input_feed, hidden)
    out32 = jax.block_until_ready(out32)
    h1_32 = jax.block_until_ready(h1_32)
    ref_out32, (ref_h1_32,) = _reference_forward(params, input_feed, hidden, jnp.float32)
    assert out32.shape == (batch, rnn_size)
    assert h1_32.shape == (num_layers, batch, rnn_size)
    assert jnp.allclose(out32, ref_out32, atol=1e-4, rtol=1e-4)
    assert jnp.allclose(h1_32, ref_h1_32, atol=1e-4, rtol=1e-4)

    # --- bf16 weights (recommended production config): looser check -----------
    packed16 = pack_stacked_gru_params(params, input_size, rnn_size,
                                       weight_dtype=jnp.bfloat16)
    out16, (h1_16,) = stacked_gru_forward(packed16, input_feed, hidden)
    out16 = jax.block_until_ready(out16)
    h1_16 = jax.block_until_ready(h1_16)
    ref_out16, (ref_h1_16,) = _reference_forward(params, input_feed, hidden, jnp.bfloat16)
    assert jnp.allclose(out16, ref_out16, atol=5e-2, rtol=5e-2)
    assert jnp.allclose(h1_16, ref_h1_16, atol=5e-2, rtol=5e-2)

    print("KERNEL_OK")
</pallas_src>

<mosaic_0001>
module attributes {stable_mosaic.version = 11 : i64} {
  func.func @stacked_gru_kernel(%arg0: i32, %arg1: memref<8x128xf32, #tpu.memory_space<vmem>>, %arg2: memref<1x8x128xf32, #tpu.memory_space<vmem>>, %arg3: memref<128x384xf32, #tpu.memory_space<vmem>>, %arg4: memref<1x264x384xf32, #tpu.memory_space<vmem>>, %arg5: memref<1x8x128xf32, #tpu.memory_space<vmem>>, %arg6: memref<8x128xf32, #tpu.memory_space<vmem>>, %arg7: memref<8x384xf32, #tpu.memory_space<vmem>>) attributes {dimension_semantics = [#tpu.dimension_semantics<arbitrary>], iteration_bounds = array<i64: 3>, scalar_prefetch = 0 : i64, scratch_operands = 2 : i64, tpu.core_type = #tpu.core_type<tc>, window_params = [{pipeline_mode = #tpu.pipeline_mode<synchronous>, transform_indices = @transform_0, window_bounds = array<i64: 8, 128>}, {transform_indices = @transform_1, window_bounds = array<i64: 1, 8, 128>}, {pipeline_mode = #tpu.pipeline_mode<synchronous>, transform_indices = @transform_2, window_bounds = array<i64: 128, 384>}, {transform_indices = @transform_3, window_bounds = array<i64: 1, 264, 384>}, {transform_indices = @transform_4, window_bounds = array<i64: 1, 8, 128>}]} {
    %c0_i32 = arith.constant 0 : i32
    %0 = arith.cmpi eq, %arg0, %c0_i32 : i32
    %1 = arith.extui %0 : i1 to i32
    %c0_i32_0 = arith.constant 0 : i32
    %2 = arith.cmpi ne, %1, %c0_i32_0 : i32
    scf.if %2 {
      %c0_19 = arith.constant 0 : index
      %c0_20 = arith.constant 0 : index
      %50 = vector.load %arg1[%c0_19, %c0_20] : memref<8x128xf32, #tpu.memory_space<vmem>>, vector<8x128xf32>
      %c0_21 = arith.constant 0 : index
      %c0_22 = arith.constant 0 : index
      %51 = vector.load %arg3[%c0_21, %c0_22] : memref<128x384xf32, #tpu.memory_space<vmem>>, vector<128x384xf32>
      %cst_23 = arith.constant dense<0.000000e+00> : vector<8x384xf32>
      %52 = tpu.matmul %50, %51, %cst_23 {dimension_numbers = #tpu.dot_dimension_numbers<[1], [0], [0], [1], [0, 0, 1, 1], [], []>} : vector<8x128xf32>, vector<128x384xf32>, vector<8x384xf32> -> vector<8x384xf32>
      %c0_24 = arith.constant 0 : index
      %c0_25 = arith.constant 0 : index
      %53 = vector.load %arg7[%c0_24, %c0_25] : memref<8x384xf32, #tpu.memory_space<vmem>>, vector<8x384xf32>
      tpu.vector_store %arg7[%c0_24, %c0_25], %52 {strides = array<i32>} : memref<8x384xf32, #tpu.memory_space<vmem>>, vector<8x384xf32>,
    } else {
    }
    %c0_i32_1 = arith.constant 0 : i32
    %3 = arith.cmpi sgt, %arg0, %c0_i32_1 : i32
    %4 = arith.extui %3 : i1 to i32
    %c0_i32_2 = arith.constant 0 : i32
    %5 = arith.cmpi ne, %4, %c0_i32_2 : i32
    scf.if %5 {
      %c0_19 = arith.constant 0 : index
      %c0_20 = arith.constant 0 : index
      %50 = vector.load %arg6[%c0_19, %c0_20] : memref<8x128xf32, #tpu.memory_space<vmem>>, vector<8x128xf32>
      %c0_21 = arith.constant 0 : index
      %c0_22 = arith.constant 0 : index
      %c0_23 = arith.constant 0 : index
      %51 = vector.load %arg4[%c0_21, %c0_22, %c0_23] : memref<1x264x384xf32, #tpu.memory_space<vmem>>, vector<1x128x384xf32>
      %52 = vector.shape_cast %51 : vector<1x128x384xf32> to vector<128x384xf32>
      %cst_24 = arith.constant dense<0.000000e+00> : vector<8x384xf32>
      %53 = tpu.matmul %50, %52, %cst_24 {dimension_numbers = #tpu.dot_dimension_numbers<[1], [0], [0], [1], [0, 0, 1, 1], [], []>} : vector<8x128xf32>, vector<128x384xf32>, vector<8x384xf32> -> vector<8x384xf32>
      %c0_25 = arith.constant 0 : index
      %c0_26 = arith.constant 0 : index
      %54 = vector.load %arg7[%c0_25, %c0_26] : memref<8x384xf32, #tpu.memory_space<vmem>>, vector<8x384xf32>
      tpu.vector_store %arg7[%c0_25, %c0_26], %53 {strides = array<i32>} : memref<8x384xf32, #tpu.memory_space<vmem>>, vector<8x384xf32>,
    } else {
    }
    %c0 = arith.constant 0 : index
    %c0_3 = arith.constant 0 : index
    %c0_4 = arith.constant 0 : index
    %6 = vector.load %arg2[%c0, %c0_3, %c0_4] : memref<1x8x128xf32, #tpu.memory_space<vmem>>, vector<1x8x128xf32>
    %7 = vector.shape_cast %6 : vector<1x8x128xf32> to vector<8x128xf32>
    %c0_5 = arith.constant 0 : index
    %c128 = arith.constant 128 : index
    %c0_6 = arith.constant 0 : index
    %8 = vector.load %arg4[%c0_5, %c128, %c0_6] : memref<1x264x384xf32, #tpu.memory_space<vmem>>, vector<1x128x384xf32>
    %9 = vector.shape_cast %8 : vector<1x128x384xf32> to vector<128x384xf32>
    %cst = arith.constant dense<0.000000e+00> : vector<8x384xf32>
    %10 = tpu.matmul %7, %9, %cst {dimension_numbers = #tpu.dot_dimension_numbers<[1], [0], [0], [1], [0, 0, 1, 1], [], []>} : vector<8x128xf32>, vector<128x384xf32>, vector<8x384xf32> -> vector<8x384xf32>
    %c0_7 = arith.constant 0 : index
    %c256 = arith.constant 256 : index
    %c0_8 = arith.constant 0 : index
    %11 = vector.load %arg4[%c0_7, %c256, %c0_8] : memref<1x264x384xf32, #tpu.memory_space<vmem>>, vector<1x2x384xf32>
    %12 = vector.shape_cast %11 : vector<1x2x384xf32> to vector<2x384xf32>
    %13 = vector.extract_strided_slice %12 {offsets = [0, 0], sizes = [1, 384], strides = [1, 1]} : vector<2x384xf32> to vector<1x384xf32>
    %14 = vector.extract_strided_slice %12 {offsets = [1, 256], sizes = [1, 128], strides = [1, 1]} : vector<2x384xf32> to vector<1x128xf32>
    %c0_9 = arith.constant 0 : index
    %c0_10 = arith.constant 0 : index
    %15 = vector.load %arg7[%c0_9, %c0_10] : memref<8x384xf32, #tpu.memory_space<vmem>>, vector<8x384xf32>
    %16 = vector.broadcast %13 : vector<1x384xf32> to vector<8x384xf32>
    %17 = arith.addf %15, %16 : vector<8x384xf32>
    %18 = vector.extract_strided_slice %17 {offsets = [0, 0], sizes = [8, 128], strides = [1, 1]} : vector<8x384xf32> to vector<8x128xf32>
    %19 = vector.extract_strided_slice %10 {offsets = [0, 0], sizes = [8, 128], strides = [1, 1]} : vector<8x384xf32> to vector<8x128xf32>
    %20 = arith.addf %18, %19 : vector<8x128xf32>
    %21 = arith.negf %20 : vector<8x128xf32>
    %22 = math.exp %21 : vector<8x128xf32>
    %cst_11 = arith.constant 1.000000e+00 : f32
    %23 = vector.broadcast %cst_11 : f32 to vector<8x128xf32>
    %24 = arith.addf %23, %22 : vector<8x128xf32>
    %25 = arith.divf %23, %24 : vector<8x128xf32>
    %26 = vector.extract_strided_slice %17 {offsets = [0, 128], sizes = [8, 128], strides = [1, 1]} : vector<8x384xf32> to vector<8x128xf32>
    %27 = vector.extract_strided_slice %10 {offsets = [0, 128], sizes = [8, 128], strides = [1, 1]} : vector<8x384xf32> to vector<8x128xf32>
    %28 = arith.addf %26, %27 : vector<8x128xf32>
    %29 = arith.negf %28 : vector<8x128xf32>
    %30 = math.exp %29 : vector<8x128xf32>
    %cst_12 = arith.constant 1.000000e+00 : f32
    %31 = vector.broadcast %cst_12 : f32 to vector<8x128xf32>
    %32 = arith.addf %31, %30 : vector<8x128xf32>
    %33 = arith.divf %31, %32 : vector<8x128xf32>
    %34 = vector.extract_strided_slice %17 {offsets = [0, 256], sizes = [8, 128], strides = [1, 1]} : vector<8x384xf32> to vector<8x128xf32>
    %35 = vector.extract_strided_slice %10 {offsets = [0, 256], sizes = [8, 128], strides = [1, 1]} : vector<8x384xf32> to vector<8x128xf32>
    %36 = vector.broadcast %14 : vector<1x128xf32> to vector<8x128xf32>
    %37 = arith.addf %35, %36 : vector<8x128xf32>
    %38 = arith.mulf %25, %37 : vector<8x128xf32>
    %39 = arith.addf %34, %38 : vector<8x128xf32>
    %40 = math.tanh %39 : vector<8x128xf32>
    %cst_13 = arith.constant 1.000000e+00 : f32
    %41 = vector.broadcast %cst_13 : f32 to vector<8x128xf32>
    %42 = arith.subf %41, %33 : vector<8x128xf32>
    %43 = arith.mulf %42, %40 : vector<8x128xf32>
    %44 = arith.mulf %33, %7 : vector<8x128xf32>
    %45 = arith.addf %43, %44 : vector<8x128xf32>
    %c0_14 = arith.constant 0 : index
    %c0_15 = arith.constant 0 : index
    %c0_16 = arith.constant 0 : index
    %46 = vector.load %arg5[%c0_14, %c0_15, %c0_16] : memref<1x8x128xf32, #tpu.memory_space<vmem>>, vector<1x8x128xf32>
    %47 = vector.shape_cast %46 : vector<1x8x128xf32> to vector<8x128xf32>
    %48 = vector.shape_cast %45 : vector<8x128xf32> to vector<1x8x128xf32>
    tpu.vector_store %arg5[%c0_14, %c0_15, %c0_16], %48 {strides = array<i32>} : memref<1x8x128xf32, #tpu.memory_space<vmem>>, vector<1x8x128xf32>,
    %c0_17 = arith.constant 0 : index
    %c0_18 = arith.constant 0 : index
    %49 = vector.load %arg6[%c0_17, %c0_18] : memref<8x128xf32, #tpu.memory_space<vmem>>, vector<8x128xf32>
    tpu.vector_store %arg6[%c0_17, %c0_18], %45 {strides = array<i32>} : memref<8x128xf32, #tpu.memory_space<vmem>>, vector<8x128xf32>,
    return
  }
  func.func @transform_0(%arg0: i32) -> (i32, i32) {
    %c0_i32 = arith.constant 0 : i32
    %c0_i32_0 = arith.constant 0 : i32
    %c0_i32_1 = arith.constant 0 : i32
    return %c0_i32, %c0_i32_0 : i32, i32
  }
  func.func @transform_1(%arg0: i32) -> (i32, i32, i32) {
    %c0_i32 = arith.constant 0 : i32
    %c0_i32_0 = arith.constant 0 : i32
    %c0_i32_1 = arith.constant 0 : i32
    return %arg0, %c0_i32, %c0_i32_0 : i32, i32, i32
  }
  func.func @transform_2(%arg0: i32) -> (i32, i32) {
    %c0_i32 = arith.constant 0 : i32
    %c0_i32_0 = arith.constant 0 : i32
    %c0_i32_1 = arith.constant 0 : i32
    return %c0_i32, %c0_i32_0 : i32, i32
  }
  func.func @transform_3(%arg0: i32) -> (i32, i32, i32) {
    %c0_i32 = arith.constant 0 : i32
    %c0_i32_0 = arith.constant 0 : i32
    %c0_i32_1 = arith.constant 0 : i32
    return %arg0, %c0_i32, %c0_i32_0 : i32, i32, i32
  }
  func.func @transform_4(%arg0: i32) -> (i32, i32, i32) {
    %c0_i32 = arith.constant 0 : i32
    %c0_i32_0 = arith.constant 0 : i32
    %c0_i32_1 = arith.constant 0 : i32
    return %arg0, %c0_i32, %c0_i32_0 : i32, i32, i32
  }
}

</mosaic_0001>

<bundles_post_ra>
// kernel: tpu_custom_call.1
= control target key start
LH: loop header
LB: loop body
LE: loop exit
PB: predicated region body
PF: predicated region fallthrough
CT: control target
= control target key end

     0   :  { %9 = vsyncpa [#allocation5], 0  ;;  %s2132_s0 = inlined_call_operand.hbm [shape: f32[8,128], index: 0, kind: input, shape index: {}]   ;;  %s2133_s1 = inlined_call_operand.hbm [shape: f32[3,8,128], index: 1, kind: input, shape index: {}]   ;;  %s2134_s2 = inlined_call_operand.hbm [shape: f32[128,384], index: 2, kind: input, shape index: {}]   ;;  %s2135_s3 = inlined_call_operand.hbm [shape: f32[3,264,384], index: 3, kind: input, shape index: {}]   ;;  %s2136_s4 = inlined_call_operand.hbm [shape: f32[3,8,128], index: 4, kind: output, shape index: {}]  }
   0x1   :  { %10 = vsyncpa [#allocation8], 0 }
   0x2   :  { %12 = vsyncpa [#allocation8 + $0x1], 0 }
   0x3   :  { %13 = vsyncpa [#allocation11], 0 }
   0x4   :  { %15 = vsyncpa [#allocation11 + $0x1], 0 }
   0x5   :  { %16 = vsyncpa [#allocation6], 0 }
   0x6   :  { %18 = vsyncpa [#allocation6 + $0x1], 0  ;;  %s1719_s15 = smov 0   ;;  %s1721_s16 = smov 0  }
   0x7   :  { %s1723_s17 = smov 0   ;;  %s1725_s18 = smov 0  }
   0x8 LB: > { %s1740_s19 = sadd.s32 4294967295, %s1676_s18   ;;  %s1041_s20 = sadd.s32 4294967294, %s1676_s18   ;;  %s1676_s18 = sphi %s1725_s18, %s2160_s18   ;;  %s1672_s17 = sphi %s1723_s17, %s2159_s17   ;;  %s1668_s16 = sphi %s1721_s16, %s2158_s16   ;;  %s1664_s15 = sphi %s1719_s15, %s2157_s15  }
   0x9   : > { %p65_p0 = scmp.ne.s32.totalorder %s1668_s16, %s1664_s15  ;;  %p2137_p1 = scmp.eq.s32.totalorder %s1740_s19, 0 }
   0xa   : > { %p142_p3 = scmp.eq.s32.totalorder %s1041_s20, 2  ;;  %p1042_p5 = scmp.ge.s32.totalorder %s1676_s18, 1 }
   0xb   : > { %p1749_p4 = por %p2137_p1, %p65_p0  ;;  %p149_p7 = scmp.lt.s32.totalorder %s1676_s18, 4 }
   0xc   : > { %p1754_p6 = por %p142_p3, %p65_p0  ;;  %s1678_s24 = smov [#allocation9]  }
   0xd   : > { %s2141_s21 = scalar_select %p1749_p4, 1, 0 }
   0xe   : > { %s2142_s22 = scalar_select %p1754_p6, 1, 0 }
   0xf   : > { %p1760_p9 = pnand %p1042_p5, %p149_p7  ;;  %s172_s25 = sshll.u32 %s1678_s24, 4  ;;  %s173_s25 = int_to_ptr.vmem [resolvable:$true] %s172_s25 }
  0x10   : > { %s1679_s27 = smov [#allocation4]   ;;  %s1482_s5 = scalar_lea.hbm %s2134_s2, 6144 }
  0x11   : > { %s2143_s23 = scalar_select %p1760_p9, 1, 0 }
  0x12   : > { %p1403_p10 = pneg %p1760_p9  ;;  %s162_s28 = sshll.u32 %s1679_s27, 4  ;;  %s1772_s28 = int_to_ptr.vmem [resolvable:$true] %s162_s28 }
  0x13   : > { %p1483_p12 = scmp.ne.s32.totalorder %s2134_s2, %s1482_s5  ;;  %p1489_p5 = scmp.lt.u32.totalorder %s1482_s5, %s2134_s2 }
  0x14   : > { %p1768_p11 = pnand %p1403_p10, %p2137_p1 }
  0x16   : > { %p1484_p13 = pneg %p1768_p11 }
  0x18   : > { %p1485_p0 = pnand %p1484_p13, %p1483_p12 }
  0x1a   : > { %p1486_p3 = pneg %p1485_p0 }
  0x1c   : > { %p1491_p7 = pnand %p1489_p5, %p1486_p3 }
  0x1e   : > { %1494 = shalt.err (!%p1491_p7)
}
  0x1f   : > { %s1495_s10 = scalar_lea.vmem %s173_s25, 6144  ;;  %p1503_p2 = scmp.lt.s32.totalorder %s173_s25, %s173_s25 }
  0x20   : > { %p1496_p10 = scmp.ne.s32.totalorder %s173_s25, %s1495_s10  ;;  %p1504_p6 = scmp.lt.s32.totalorder %s1495_s10, %s1495_s10 }
  0x22   : > { %p1498_p8 = pnand %p1496_p10, %p1484_p13  ;;  %p1505_p4 = por %p1504_p6, %p1503_p2 }
  0x24   : > { %p1499_p1 = pneg %p1498_p8 }
  0x26   : > { %p1506_p9 = pnand %p1505_p4, %p1499_p1 }
  0x28   : > { %1509 = shalt.err (!%p1506_p9)
}
  0x29   : > { %s2140_s11 = smov 384   ;;  %s1681_s12 = smov 24  }
  0x2a   : > { %1409 = dma.hbm_to_vmem [thread:$0]  (!%p1768_p11), %s2134_s2, 6144, %s173_s25, [#allocation8], %s2140_s11, %s2140_s11, %s1681_s12  }
  0x2b   : > { %s1510_s27 = scalar_lea.hbm %s2132_s0, 128 }
  0x2c   : > { %p1511_p1 = scmp.ne.s32.totalorder %s2132_s0, %s1510_s27  ;;  %p1517_p6 = scmp.lt.u32.totalorder %s1510_s27, %s2132_s0 }
  0x2e   : > { %p1513_p2 = pnand %p1511_p1, %p1484_p13 }
  0x30   : > { %p1514_p4 = pneg %p1513_p2 }
  0x32   : > { %p1519_p8 = pnand %p1517_p6, %p1514_p4 }
  0x34   : > { %1522 = shalt.err (!%p1519_p8)
}
  0x35   : > { %s1523_s25 = scalar_lea.vmem %s1772_s28, 128  ;;  %p1531_p3 = scmp.lt.s32.totalorder %s1772_s28, %s1772_s28 }
  0x36   : > { %p1524_p9 = scmp.ne.s32.totalorder %s1772_s28, %s1523_s25  ;;  %p1532_p5 = scmp.lt.s32.totalorder %s1523_s25, %s1523_s25 }
  0x38   : > { %p1526_p12 = pnand %p1524_p9, %p1484_p13  ;;  %p1533_p7 = por %p1532_p5, %p1531_p3 }
  0x3a   : > { %p1527_p0 = pneg %p1526_p12 }
  0x3c   : > { %p1534_p10 = pnand %p1533_p7, %p1527_p0 }
  0x3e   : > { %1537 = shalt.err (!%p1534_p10)
}
  0x3f   : > { %1406 = dma.hbm_to_vmem [thread:$0]  (!%p1768_p11), %s2132_s0, 128, %s1772_s28, [#allocation5]  }
  0x40   : > { %s1825_s9 = sadd.s32 1, %s1676_s18   ;;  %s52_s26 = sadd.s32 1, %s1672_s17 }
  0x41   : > { %s49_s10 = ssub.s32 %s1676_s18, %s1825_s9  ;;  %p59_p13 = scmp.ne.s32.totalorder %s1672_s17, %s1668_s16 }
  0x42   : > { %p50_p1 = scmp.eq.s32.totalorder %s49_s10, 0  ;;  %p60_p2 = scmp.eq.s32.totalorder %s1676_s18, 0 }
  0x43   : > { %p2145_p4 = scmp.eq.s32.totalorder %s1740_s19, 2  ;;  %p1423_p8 = scmp.lt.s32.totalorder %s1676_s18, 3 }
  0x44   : > { %s1841_s14 = scalar_select %p50_p1, %s1672_s17, %s52_s26  }
  0x45   : > { %p1835_p6 = por %p2145_p4, %p59_p13  ;;  %p61_p9 = por %p60_p2, %p59_p13 }
  0x46   : > { %s186_s20 = sand.u32 1, %s1676_s18   ;;  %s1845_s24 = sand.u32 1, %s1672_s17  }
  0x47   : > { %s1046_s28 = sshll.u32 %s1845_s24, 3  ;;  %s1047_s27 = sshll.u32 %s1676_s18, 7 }
  0x48   : > { %s1852_s5 = scalar_lea.hbm %s2133_s1, %s1047_s27  ;;  %s190_s6 = scalar_lea.vmem [#allocation7], %s1046_s28 }
  0x49   : > { %s197_s25 = sshll.u32 %s190_s6, 4  ;;  %p1854_p11 = pnand %p1423_p8, %p61_p9  ;;  %s1858_s25 = int_to_ptr.vmem [resolvable:$true] %s197_s25 }
  0x4a   : > { %s1386_s8 = smul.u32 792, %s1845_s24  ;;  %s187_s26 = scalar_lea.sflag [#allocation8], %s186_s20 }
  0x4b   : > { %s1538_s10 = scalar_lea.hbm %s1852_s5, 128  ;;  %p1540_p0 = pneg %p1854_p11 }
  0x4c   : > { %p1539_p12 = scmp.ne.s32.totalorder %s1852_s5, %s1538_s10  ;;  %s1543_s29 = scalar_lea.hbm %s2133_s1, 384 }
  0x4d   : > { %p1544_p7 = scmp.lt.u32.totalorder %s1852_s5, %s2133_s1  ;;  %p1545_p10 = scmp.lt.u32.totalorder %s1543_s29, %s1538_s10 }
  0x4e   : > { %p1541_p3 = pnand %p1540_p0, %p1539_p12  ;;  %p1547_p1 = scmp.lt.u32.totalorder %s1538_s10, %s1852_s5 }
  0x4f   : > { %p1546_p13 = por %p1545_p10, %p1544_p7 }
  0x50   : > { %p1542_p5 = pneg %p1541_p3 }
  0x51   : > { %p1548_p2 = por %p1547_p1, %p1546_p13 }
  0x53   : > { %p1549_p4 = pnand %p1548_p2, %p1542_p5 }
  0x55   : > { %1552 = shalt.err (!%p1549_p4)
}
  0x56   : > { %s1553_s20 = scalar_lea.vmem %s1858_s25, 128  ;;  %s1682_s28 = smov [#allocation7]  }
  0x57   : > { %p1554_p8 = scmp.ne.s32.totalorder %s1858_s25, %s1553_s20  ;;  %s1558_s27 = sshll.u32 %s1682_s28, 4  ;;  %s1559_s27 = int_to_ptr.vmem [resolvable:$false] %s1558_s27 }
  0x58   : > { %s1560_s30 = scalar_lea.vmem %s1559_s27, 256  ;;  %p1561_p3 = scmp.lt.s32.totalorder %s1858_s25, %s1559_s27 }
  0x59   : > { %p1556_p9 = pnand %p1554_p8, %p1540_p0  ;;  %p1562_p7 = scmp.lt.s32.totalorder %s1560_s30, %s1553_s20 }
  0x5b   : > { %p1557_p12 = pneg %p1556_p9  ;;  %p1563_p10 = por %p1562_p7, %p1561_p3 }
  0x5d   : > { %p1564_p13 = pnand %p1563_p10, %p1557_p12 }
  0x5f   : > { %1567 = shalt.err (!%p1564_p13)
}
  0x60   : > { %1413 = dma.hbm_to_vmem [thread:$0]  (!%p1854_p11), %s1852_s5, 128, %s1858_s25, %s187_s26  }
  0x61   : > { %s1387_s10 = smul.u32 12672, %s1676_s18  ;;  %s208_s29 = scalar_lea.vmem [#allocation10], %s1386_s8 }
  0x62   : > { %s215_s6 = sshll.u32 %s208_s29, 4  ;;  %s205_s27 = scalar_lea.sflag [#allocation11], %s1845_s24  ;;  %s1894_s6 = int_to_ptr.vmem [resolvable:$true] %s215_s6 }
  0x63   : > { %s1892_s20 = scalar_lea.hbm %s2135_s3, %s1387_s10  ;;  %s1573_s8 = scalar_lea.hbm %s2135_s3, 38016 }
  0x64   : > { %s1568_s30 = scalar_lea.hbm %s1892_s20, 12672  ;;  %p1574_p4 = scmp.lt.u32.totalorder %s1892_s20, %s2135_s3 }
  0x65   : > { %p1569_p5 = scmp.ne.s32.totalorder %s1892_s20, %s1568_s30  ;;  %p1575_p8 = scmp.lt.u32.totalorder %s1573_s8, %s1568_s30 }
  0x66   : > { %p1577_p12 = scmp.lt.u32.totalorder %s1568_s30, %s1892_s20 }
  0x67   : > { %p1571_p1 = pnand %p1569_p5, %p1540_p0  ;;  %p1576_p9 = por %p1575_p8, %p1574_p4 }
  0x69   : > { %p1572_p2 = pneg %p1571_p1  ;;  %p1578_p3 = por %p1577_p12, %p1576_p9 }
  0x6b   : > { %p1579_p7 = pnand %p1578_p3, %p1572_p2 }
  0x6d   : > { %1582 = shalt.err (!%p1579_p7)
}
  0x6e   : > { %s1583_s10 = scalar_lea.vmem %s1894_s6, 12672  ;;  %s1683_s29 = smov [#allocation10]  }
  0x6f   : > { %p1584_p10 = scmp.ne.s32.totalorder %s1894_s6, %s1583_s10  ;;  %s1588_s28 = sshll.u32 %s1683_s29, 4  ;;  %s1589_s28 = int_to_ptr.vmem [resolvable:$false] %s1588_s28 }
  0x70   : > { %s1590_s5 = scalar_lea.vmem %s1589_s28, 25344  ;;  %p1591_p1 = scmp.lt.s32.totalorder %s1894_s6, %s1589_s28 }
  0x71   : > { %p1586_p13 = pnand %p1584_p10, %p1540_p0  ;;  %p1592_p4 = scmp.lt.s32.totalorder %s1590_s5, %s1583_s10 }
  0x73   : > { %p1587_p5 = pneg %p1586_p13  ;;  %p1593_p8 = por %p1592_p4, %p1591_p1 }
  0x75   : > { %p1594_p9 = pnand %p1593_p8, %p1587_p5 }
  0x77   : > { %1597 = shalt.err (!%p1594_p9)
}
  0x78   : > { %s2148_s30 = smov 384   ;;  %p2149_p0 = scmp.ne.s32.totalorder %s2143_s23, 0 }
  0x79   : > { %1416 = dma.hbm_to_vmem [thread:$0]  (!%p1854_p11), %s1892_s20, 12672, %s1894_s6, %s205_s27, %s2148_s30, %s2148_s30, %s1681_s12  }
  0x7a   : > { %227 = sbr.rel (%p2149_p0) target bundleno = 950 (0x3b6), region = 36  ;;  %p2150_p2 = scmp.eq.s32.totalorder (!%p2149_p0), %s1740_s19, 0 }
  0x81   : > { %1643 = dma.done.wait (%p2150_p2), [#allocation5], 128   ;;  %p2151_p12 = pmov %p2150_p2 }
  0x82   : > { %s233_s7 = sand.u32 1, %s1740_s19   ;;  %s1933_s25 = sand.u32 1, %s1668_s16  }
  0x83   : > { %1645 = vsyncadd (%p2151_p12), [#allocation5], 4294967168  ;;  %s1051_s24 = sshll.u32 %s1933_s25, 3  ;;  %s234_s8 = scalar_lea.sflag [#allocation8], %s233_s7 }
  0x84   : > { %s1936_s11 = scalar_lea.vmem [#allocation7], %s1051_s24  ;;  %p2152_p11 = scmp.ne.s32.totalorder %s2141_s21, 0 }
  0x86   : > { %1647 = dma.done.wait (%p2152_p11), %s234_s8, 128  }
  0x87   : > { %1649 = vsyncadd (%p2152_p11), %s234_s8, 4294967168  ;;  %p2153_p3 = pmov %p2150_p2 }
  0x88   : > { %p2154_p7 = pmov %p2150_p2 }
  0x89   : > { %1651 = dma.done.wait (%p2153_p3), [#allocation8], 6144  }
  0x8a   : > { %1653 = vsyncadd (%p2154_p7), [#allocation8], 4294961152  ;;  %s1388_s23 = smul.u32 792, %s1933_s25  ;;  %s247_s12 = scalar_lea.sflag [#allocation11], %s1933_s25 }
  0x8c   : > { %s1948_s6 = scalar_lea.vmem [#allocation10], %s1388_s23 }
  0x8d   : > { %1655 = dma.done.wait (%p2152_p11), %s247_s12, 12672  }
  0x8e   : > { %1657 = vsyncadd (%p2152_p11), %s247_s12, 4294954624  ;;  %s1954_s20 = scalar_lea.vmem [#allocation12], %s1051_s24  ;;  %p2155_p10 = scmp.ne.s32.totalorder %s1740_s19, 0 }
  0x8f   : > { %v286_v0 = vld [vmem:[#allocation9 + $0x8] sm:$0xff] (!%p2155_p10)  ;;  %v289_v1 = vld [vmem:[#allocation9 + $0x20] sm:$0xff] (!%p2155_p10)  ;;  %v1684_v4 = vmov (!%p2155_p10), 0.0|0.0   ;;  %v288_v5 = vld [vmem:[#allocation9 + $0x18] sm:$0xff] (!%p2155_p10)  ;;  %v1685_v8 = vmov (!%p2155_p10), 0.0   ;;  %vm1686_vm0 = vmmov (!%p2155_p10), 0  }
  0x90   : > { %283 = sbr.rel (%p2155_p10) target bundleno = 392 (0x188), region = 56  ;;  %v285_v2 = vld [vmem:[#allocation9] sm:$0xff] (!%p2155_p10)  ;;  %v1218_v3 = vpack.c.bf16 (!%p2155_p10), %v289_v1, %v286_v0  ;;  %1250 = vmatprep.subr.bf16.mxu1 (!%p2155_p10), %v1684_v4  ;;  %v287_v6 = vld [vmem:[#allocation9 + $0x10] sm:$0xff] (!%p2155_p10)  ;;  %v290_v7 = vld [vmem:[#allocation9 + $0x28] sm:$0xff] (!%p2155_p10)  ;;  %397 = vmatprep.mubr.f32.mxu0 (!%p2155_p10), %v1685_v8 }
  0x91   : > { %v1220_v9 = vpack.c.bf16 (!%p2155_p10), %v288_v5, %v285_v2  ;;  %v1251_v10 = vpack.c.bf16 (!%p2155_p10), %v290_v7, %v287_v6  ;;  %v292_v11 = vld [vmem:[#allocation9 + $0x38] sm:$0xff] (!%p2155_p10)  ;;  %v295_v12 = vld [vmem:[#allocation9 + $0x50] sm:$0xff] (!%p2155_p10)  ;;  %1145 = vmatprep.mubr.msk.f32.mxu1 (!%p2155_p10), %vm1686_vm0, %v1685_v8  ;;  %v294_v15 = vld [vmem:[#allocation9 + $0x48] sm:$0xff] (!%p2155_p10) }
  0x92   : > { %v291_v13 = vld [vmem:[#allocation9 + $0x30] sm:$0xff] (!%p2155_p10)  ;;  %1219 = vmatprep.subr.bf16.mxu0 (!%p2155_p10), %v1218_v3  ;;  %v1222_v14 = vpack.c.bf16 (!%p2155_p10), %v295_v12, %v292_v11  ;;  %v293_v16 = vld [vmem:[#allocation9 + $0x40] sm:$0xff] (!%p2155_p10)  ;;  %v296_v17 = vld [vmem:[#allocation9 + $0x58] sm:$0xff] (!%p2155_p10) }
  0x93   : > { %1221 = vmatpush1.bf16.msra.mxu0 (!%p2155_p10), %v1220_v9  ;;  %1252 = vmatpush3.bf16.msra.mxu1 (!%p2155_p10), %v1251_v10  ;;  %v1224_v18 = vpack.c.bf16 (!%p2155_p10), %v294_v15, %v291_v13  ;;  %v1254_v19 = vpack.c.bf16 (!%p2155_p10), %v296_v17, %v293_v16  ;;  %v298_v20 = vld [vmem:[#allocation9 + $0x68] sm:$0xff] (!%p2155_p10)  ;;  %v301_v21 = vld [vmem:[#allocation9 + $0x80] sm:$0xff] (!%p2155_p10)  ;;  %v300_v24 = vld [vmem:[#allocation9 + $0x78] sm:$0xff] (!%p2155_p10) }
  0x94   : > { %v297_v22 = vld [vmem:[#allocation9 + $0x60] sm:$0xff] (!%p2155_p10)  ;;  %1223 = vmatprep.subr.bf16.mxu0 (!%p2155_p10), %v1222_v14  ;;  %1253 = vmatprep.subr.bf16.mxu1 (!%p2155_p10), %v1684_v4  ;;  %v1226_v23 = vpack.c.bf16 (!%p2155_p10), %v301_v21, %v298_v20  ;;  %v299_v25 = vld [vmem:[#allocation9 + $0x70] sm:$0xff] (!%p2155_p10)  ;;  %v302_v26 = vld [vmem:[#allocation9 + $0x88] sm:$0xff] (!%p2155_p10) }
  0x95   : > { %v304_v27 = vld [vmem:[#allocation9 + $0x98] sm:$0xff] (!%p2155_p10)  ;;  %v307_v28 = vld [vmem:[#allocation9 + $0xb0] sm:$0xff] (!%p2155_p10)  ;;  %v1228_v29 = vpack.c.bf16 (!%p2155_p10), %v300_v24, %v297_v22  ;;  %v1257_v30 = vpack.c.bf16 (!%p2155_p10), %v302_v26, %v299_v25  ;;  %v306_v33 = vld [vmem:[#allocation9 + $0xa8] sm:$0xff] (!%p2155_p10) }
  0x96   : > { %v303_v31 = vld [vmem:[#allocation9 + $0x90] sm:$0xff] (!%p2155_p10)  ;;  %v1230_v32 = vpack.c.bf16 (!%p2155_p10), %v307_v28, %v304_v27  ;;  %v305_v34 = vld [vmem:[#allocation9 + $0xa0] sm:$0xff] (!%p2155_p10)  ;;  %v308_v35 = vld [vmem:[#allocation9 + $0xb8] sm:$0xff] (!%p2155_p10) }
  0x97   : > { %1225 = vmatpush1.bf16.msra.mxu0 %v1224_v18  ;;  %1255 = vmatpush3.bf16.msra.mxu1 %v1254_v19  ;;  %v310_v36 = vld [vmem:[#allocation9 + $0xc8] sm:$0xff]  ;;  %v313_v37 = vld [vmem:[#allocation9 + $0xe0] sm:$0xff]  ;;  %v1232_v38 = vpack.c.bf16 %v306_v33, %v303_v31  ;;  %v1260_v39 = vpack.c.bf16 %v308_v35, %v305_v34  ;;  %v312_v42 = vld [vmem:[#allocation9 + $0xd8] sm:$0xff] }
  0x98   : > { %1227 = vmatprep.subr.bf16.mxu0 %v1226_v23  ;;  %1256 = vmatprep.subr.bf16.mxu1 %v1684_v4  ;;  %v309_v40 = vld [vmem:[#allocation9 + $0xc0] sm:$0xff]  ;;  %v1234_v41 = vpack.c.bf16 %v313_v37, %v310_v36  ;;  %v311_v43 = vld [vmem:[#allocation9 + $0xd0] sm:$0xff]  ;;  %v314_v44 = vld [vmem:[#allocation9 + $0xe8] sm:$0xff] }
  0x99   : > { %v316_v45 = vld [vmem:[#allocation9 + $0xf8] sm:$0xff]  ;;  %v319_v46 = vld [vmem:[#allocation9 + $0x110] sm:$0xff]  ;;  %v1236_v47 = vpack.c.bf16 %v312_v42, %v309_v40  ;;  %v1263_v48 = vpack.c.bf16 %v314_v44, %v311_v43  ;;  %v318_v51 = vld [vmem:[#allocation9 + $0x108] sm:$0xff] }
  0x9a   : > { %v315_v49 = vld [vmem:[#allocation9 + $0xf0] sm:$0xff]  ;;  %v1238_v50 = vpack.c.bf16 %v319_v46, %v316_v45  ;;  %v317_v52 = vld [vmem:[#allocation9 + $0x100] sm:$0xff]  ;;  %v320_v53 = vld [vmem:[#allocation9 + $0x118] sm:$0xff] }
  0x9b   : > { %1229 = vmatpush1.bf16.msra.mxu0 %v1228_v29  ;;  %1258 = vmatpush3.bf16.msra.mxu1 %v1257_v30  ;;  %v322_v54 = vld [vmem:[#allocation9 + $0x128] sm:$0xff]  ;;  %v325_v55 = vld [vmem:[#allocation9 + $0x140] sm:$0xff]  ;;  %v1240_v56 = vpack.c.bf16 %v318_v51, %v315_v49  ;;  %v1266_v57 = vpack.c.bf16 %v320_v53, %v317_v52  ;;  %v324_v60 = vld [vmem:[#allocation9 + $0x138] sm:$0xff] }
  0x9c   : > { %1231 = vmatprep.subr.bf16.mxu0 %v1230_v32  ;;  %1259 = vmatprep.subr.bf16.mxu1 %v1684_v4  ;;  %v321_v58 = vld [vmem:[#allocation9 + $0x120] sm:$0xff]  ;;  %v1242_v59 = vpack.c.bf16 %v325_v55, %v322_v54  ;;  %v323_v61 = vld [vmem:[#allocation9 + $0x130] sm:$0xff]  ;;  %v326_v62 = vld [vmem:[#allocation9 + $0x148] sm:$0xff] }
  0x9d   : > { %v328_v63 = vld [vmem:[#allocation9 + $0x158] sm:$0xff]  ;;  %v331_v0 = vld [vmem:[#allocation9 + $0x170] sm:$0xff]  ;;  %v1244_v1 = vpack.c.bf16 %v324_v60, %v321_v58  ;;  %v1269_v2 = vpack.c.bf16 %v326_v62, %v323_v61  ;;  %v330_v6 = vld [vmem:[#allocation9 + $0x168] sm:$0xff] }
  0x9e   : > { %v327_v3 = vld [vmem:[#allocation9 + $0x150] sm:$0xff]  ;;  %v1246_v5 = vpack.c.bf16 %v331_v0, %v328_v63  ;;  %v329_v7 = vld [vmem:[#allocation9 + $0x160] sm:$0xff]  ;;  %v332_v8 = vld [vmem:[#allocation9 + $0x178] sm:$0xff] }
  0x9f   : > { %1233 = vmatpush1.bf16.msra.mxu0 %v1232_v38  ;;  %1261 = vmatpush3.bf16.msra.mxu1 %v1260_v39  ;;  %v1248_v9 = vpack.c.bf16 %v330_v6, %v327_v3  ;;  %v1272_v10 = vpack.c.bf16 %v332_v8, %v329_v7  ;;  %v284_v11 = vld [vmem:[#allocation4] sm:$0xff] }
  0xa0   : > { %1235 = vmatprep.subr.bf16.mxu0 %v1234_v41  ;;  %1262 = vmatprep.subr.bf16.mxu1 %v1684_v4 }
  0xa3   : > { %1237 = vmatpush1.bf16.msra.mxu0 %v1236_v47  ;;  %1264 = vmatpush3.bf16.msra.mxu1 %v1263_v48 }
  0xa4   : > { %1239 = vmatprep.subr.bf16.mxu0 %v1238_v50  ;;  %1265 = vmatprep.subr.bf16.mxu1 %v1684_v4 }
  0xa7   : > { %1241 = vmatpush1.bf16.msra.mxu0 %v1240_v56  ;;  %1267 = vmatpush3.bf16.msra.mxu1 %v1266_v57 }
  0xa8   : > { %1243 = vmatprep.subr.bf16.mxu0 %v1242_v59  ;;  %1268 = vmatprep.subr.bf16.mxu1 %v1684_v4 }
  0xab   : > { %1245 = vmatpush1.bf16.msra.mxu0 %v1244_v1  ;;  %1270 = vmatpush3.bf16.msra.mxu1 %v1269_v2 }
  0xac   : > { %1247 = vmatprep.subr.bf16.mxu0 %v1246_v5  ;;  %1271 = vmatprep.subr.bf16.mxu1 %v1684_v4 }
  0xaf   : > { %1249 = vmatpush1.bf16.msra.mxu0 %v1248_v9  ;;  %1273 = vmatpush3.bf16.msra.mxu1 %v1272_v10 }
  0xb2   : > { %398 = vmatmul.mubr.f32.vlgmr.msra.gmra.mrb[0].mxu0 %v284_v11  ;;  %1146 = vmatmul.mubr.f32.vlgmr.msra.gmra.mrb[0].mxu1 %v284_v11 }
 0x185   : > { %v399_v12 = vpop.f32.mrb[0].mxu0  ;;  %v470_v13 = vpop.f32.mrb[0].mxu1 }
 0x186   : > { %474 = vst [vmem:[#allocation3] sm:$0xff] %v399_v12  ;;  %476 = vst [vmem:[#allocation3 + $0x10] sm:$0xff] %v470_v13  ;;  %v401_v14 = vpop.f32.mrb[1].mxu0  ;;  %v1147_v15 = vpop.f32.mrb[1].mxu1 }
 0x187   : > { %475 = vst [vmem:[#allocation3 + $0x8] sm:$0xff] %v401_v14 }
 0x188 PF: > { %p1055_p13 = scmp.le.s32.totalorder %s1740_s19, 0 }
 0x189   : > { %v483_v4 = vld [vmem:[%s1948_s6 + $0x8] sm:$0xff] (!%p1055_p13)  ;;  %v486_v16 = vld [vmem:[%s1948_s6 + $0x20] sm:$0xff] (!%p1055_p13)  ;;  %v1687_v19 = vmov (!%p1055_p13), 0.0|0.0   ;;  %v485_v20 = vld [vmem:[%s1948_s6 + $0x18] sm:$0xff] (!%p1055_p13)  ;;  %v1688_v23 = vmov (!%p1055_p13), 0.0   ;;  %vm1689_vm1 = vmmov (!%p1055_p13), 0  }
 0x18a   : > { %480 = sbr.rel (%p1055_p13) target bundleno = 642 (0x282), region = 60  ;;  %v482_v17 = vld [vmem:[%s1948_s6] sm:$0xff] (!%p1055_p13)  ;;  %v1274_v18 = vpack.c.bf16 (!%p1055_p13), %v486_v16, %v483_v4  ;;  %1306 = vmatprep.subr.bf16.mxu1 (!%p1055_p13), %v1687_v19  ;;  %v484_v21 = vld [vmem:[%s1948_s6 + $0x10] sm:$0xff] (!%p1055_p13)  ;;  %v487_v22 = vld [vmem:[%s1948_s6 + $0x28] sm:$0xff] (!%p1055_p13)  ;;  %594 = vmatprep.mubr.f32.mxu0 (!%p1055_p13), %v1688_v23 }
 0x18b   : > { %v1276_v24 = vpack.c.bf16 (!%p1055_p13), %v485_v20, %v482_v17  ;;  %v1307_v25 = vpack.c.bf16 (!%p1055_p13), %v487_v22, %v484_v21  ;;  %v489_v26 = vld [vmem:[%s1948_s6 + $0x38] sm:$0xff] (!%p1055_p13)  ;;  %v492_v27 = vld [vmem:[%s1948_s6 + $0x50] sm:$0xff] (!%p1055_p13)  ;;  %1180 = vmatprep.mubr.msk.f32.mxu1 (!%p1055_p13), %vm1689_vm1, %v1688_v23  ;;  %v491_v30 = vld [vmem:[%s1948_s6 + $0x48] sm:$0xff] (!%p1055_p13) }
 0x18c   : > { %v488_v28 = vld [vmem:[%s1948_s6 + $0x30] sm:$0xff] (!%p1055_p13)  ;;  %1275 = vmatprep.subr.bf16.mxu0 (!%p1055_p13), %v1274_v18  ;;  %v1278_v29 = vpack.c.bf16 (!%p1055_p13), %v492_v27, %v489_v26  ;;  %v490_v31 = vld [vmem:[%s1948_s6 + $0x40] sm:$0xff] (!%p1055_p13)  ;;  %v493_v32 = vld [vmem:[%s1948_s6 + $0x58] sm:$0xff] (!%p1055_p13) }
 0x18d   : > { %1277 = vmatpush1.bf16.msra.mxu0 (!%p1055_p13), %v1276_v24  ;;  %1308 = vmatpush3.bf16.msra.mxu1 (!%p1055_p13), %v1307_v25  ;;  %v1280_v33 = vpack.c.bf16 (!%p1055_p13), %v491_v30, %v488_v28  ;;  %v1310_v34 = vpack.c.bf16 (!%p1055_p13), %v493_v32, %v490_v31  ;;  %v495_v35 = vld [vmem:[%s1948_s6 + $0x68] sm:$0xff] (!%p1055_p13)  ;;  %v498_v36 = vld [vmem:[%s1948_s6 + $0x80] sm:$0xff] (!%p1055_p13)  ;;  %v497_v39 = vld [vmem:[%s1948_s6 + $0x78] sm:$0xff] (!%p1055_p13) }
 0x18e   : > { %v494_v37 = vld [vmem:[%s1948_s6 + $0x60] sm:$0xff] (!%p1055_p13)  ;;  %1279 = vmatprep.subr.bf16.mxu0 (!%p1055_p13), %v1278_v29  ;;  %1309 = vmatprep.subr.bf16.mxu1 (!%p1055_p13), %v1687_v19  ;;  %v1282_v38 = vpack.c.bf16 (!%p1055_p13), %v498_v36, %v495_v35  ;;  %v496_v40 = vld [vmem:[%s1948_s6 + $0x70] sm:$0xff] (!%p1055_p13)  ;;  %v499_v41 = vld [vmem:[%s1948_s6 + $0x88] sm:$0xff] (!%p1055_p13) }
 0x18f   : > { %v501_v42 = vld [vmem:[%s1948_s6 + $0x98] sm:$0xff] (!%p1055_p13)  ;;  %v504_v43 = vld [vmem:[%s1948_s6 + $0xb0] sm:$0xff] (!%p1055_p13)  ;;  %v1284_v44 = vpack.c.bf16 (!%p1055_p13), %v497_v39, %v494_v37  ;;  %v1313_v45 = vpack.c.bf16 (!%p1055_p13), %v499_v41, %v496_v40  ;;  %v503_v48 = vld [vmem:[%s1948_s6 + $0xa8] sm:$0xff] (!%p1055_p13) }
 0x190   : > { %v500_v46 = vld [vmem:[%s1948_s6 + $0x90] sm:$0xff] (!%p1055_p13)  ;;  %v1286_v47 = vpack.c.bf16 (!%p1055_p13), %v504_v43, %v501_v42  ;;  %v502_v49 = vld [vmem:[%s1948_s6 + $0xa0] sm:$0xff] (!%p1055_p13)  ;;  %v505_v50 = vld [vmem:[%s1948_s6 + $0xb8] sm:$0xff] (!%p1055_p13) }
 0x191   : > { %1281 = vmatpush1.bf16.msra.mxu0 %v1280_v33  ;;  %1311 = vmatpush3.bf16.msra.mxu1 %v1310_v34  ;;  %v507_v51 = vld [vmem:[%s1948_s6 + $0xc8] sm:$0xff]  ;;  %v510_v52 = vld [vmem:[%s1948_s6 + $0xe0] sm:$0xff]  ;;  %v1288_v53 = vpack.c.bf16 %v503_v48, %v500_v46  ;;  %v1316_v54 = vpack.c.bf16 %v505_v50, %v502_v49  ;;  %v509_v57 = vld [vmem:[%s1948_s6 + $0xd8] sm:$0xff] }
 0x192   : > { %1283 = vmatprep.subr.bf16.mxu0 %v1282_v38  ;;  %1312 = vmatprep.subr.bf16.mxu1 %v1687_v19  ;;  %v506_v55 = vld [vmem:[%s1948_s6 + $0xc0] sm:$0xff]  ;;  %v1290_v56 = vpack.c.bf16 %v510_v52, %v507_v51  ;;  %v508_v58 = vld [vmem:[%s1948_s6 + $0xd0] sm:$0xff]  ;;  %v511_v59 = vld [vmem:[%s1948_s6 + $0xe8] sm:$0xff] }
 0x193   : > { %v513_v60 = vld [vmem:[%s1948_s6 + $0xf8] sm:$0xff]  ;;  %v516_v61 = vld [vmem:[%s1948_s6 + $0x110] sm:$0xff]  ;;  %v1292_v62 = vpack.c.bf16 %v509_v57, %v506_v55  ;;  %v1319_v63 = vpack.c.bf16 %v511_v59, %v508_v58  ;;  %v515_v2 = vld [vmem:[%s1948_s6 + $0x108] sm:$0xff] }
 0x194   : > { %v512_v0 = vld [vmem:[%s1948_s6 + $0xf0] sm:$0xff]  ;;  %v1294_v1 = vpack.c.bf16 %v516_v61, %v513_v60  ;;  %v514_v3 = vld [vmem:[%s1948_s6 + $0x100] sm:$0xff]  ;;  %v517_v5 = vld [vmem:[%s1948_s6 + $0x118] sm:$0xff] }
 0x195   : > { %1285 = vmatpush1.bf16.msra.mxu0 %v1284_v44  ;;  %1314 = vmatpush3.bf16.msra.mxu1 %v1313_v45  ;;  %v519_v6 = vld [vmem:[%s1948_s6 + $0x128] sm:$0xff]  ;;  %v522_v7 = vld [vmem:[%s1948_s6 + $0x140] sm:$0xff]  ;;  %v1296_v8 = vpack.c.bf16 %v515_v2, %v512_v0  ;;  %v1322_v9 = vpack.c.bf16 %v517_v5, %v514_v3  ;;  %v521_v12 = vld [vmem:[%s1948_s6 + $0x138] sm:$0xff] }
 0x196   : > { %1287 = vmatprep.subr.bf16.mxu0 %v1286_v47  ;;  %1315 = vmatprep.subr.bf16.mxu1 %v1687_v19  ;;  %v518_v10 = vld [vmem:[%s1948_s6 + $0x120] sm:$0xff]  ;;  %v1298_v11 = vpack.c.bf16 %v522_v7, %v519_v6  ;;  %v520_v13 = vld [vmem:[%s1948_s6 + $0x130] sm:$0xff]  ;;  %v523_v14 = vld [vmem:[%s1948_s6 + $0x148] sm:$0xff] }
 0x197   : > { %v525_v15 = vld [vmem:[%s1948_s6 + $0x158] sm:$0xff]  ;;  %v528_v4 = vld [vmem:[%s1948_s6 + $0x170] sm:$0xff]  ;;  %v1300_v16 = vpack.c.bf16 %v521_v12, %v518_v10  ;;  %v1325_v17 = vpack.c.bf16 %v523_v14, %v520_v13  ;;  %v527_v21 = vld [vmem:[%s1948_s6 + $0x168] sm:$0xff] }
 0x198   : > { %v524_v18 = vld [vmem:[%s1948_s6 + $0x150] sm:$0xff]  ;;  %v1302_v20 = vpack.c.bf16 %v528_v4, %v525_v15  ;;  %v526_v22 = vld [vmem:[%s1948_s6 + $0x160] sm:$0xff]  ;;  %v529_v23 = vld [vmem:[%s1948_s6 + $0x178] sm:$0xff] }
 0x199   : > { %1289 = vmatpush1.bf16.msra.mxu0 %v1288_v53  ;;  %1317 = vmatpush3.bf16.msra.mxu1 %v1316_v54  ;;  %v1304_v24 = vpack.c.bf16 %v527_v21, %v524_v18  ;;  %v1328_v25 = vpack.c.bf16 %v529_v23, %v526_v22  ;;  %v481_v26 = vld [vmem:[#allocation2] sm:$0xff] }
 0x19a   : > { %1291 = vmatprep.subr.bf16.mxu0 %v1290_v56  ;;  %1318 = vmatprep.subr.bf16.mxu1 %v1687_v19 }
 0x19d   : > { %1293 = vmatpush1.bf16.msra.mxu0 %v1292_v62  ;;  %1320 = vmatpush3.bf16.msra.mxu1 %v1319_v63 }
 0x19e   : > { %1295 = vmatprep.subr.bf16.mxu0 %v1294_v1  ;;  %1321 = vmatprep.subr.bf16.mxu1 %v1687_v19 }
 0x1a1   : > { %1297 = vmatpush1.bf16.msra.mxu0 %v1296_v8  ;;  %1323 = vmatpush3.bf16.msra.mxu1 %v1322_v9 }
 0x1a2   : > { %1299 = vmatprep.subr.bf16.mxu0 %v1298_v11  ;;  %1324 = vmatprep.subr.bf16.mxu1 %v1687_v19 }
 0x1a5   : > { %1301 = vmatpush1.bf16.msra.mxu0 %v1300_v16  ;;  %1326 = vmatpush3.bf16.msra.mxu1 %v1325_v17 }
 0x1a6   : > { %1303 = vmatprep.subr.bf16.mxu0 %v1302_v20  ;;  %1327 = vmatprep.subr.bf16.mxu1 %v1687_v19 }
 0x1a9   : > { %1305 = vmatpush1.bf16.msra.mxu0 %v1304_v24  ;;  %1329 = vmatpush3.bf16.msra.mxu1 %v1328_v25 }
 0x1ac   : > { %595 = vmatmul.mubr.f32.vlgmr.msra.gmra.mrb[0].mxu0 %v481_v26  ;;  %1181 = vmatmul.mubr.f32.vlgmr.msra.gmra.mrb[0].mxu1 %v481_v26 }
 0x27f   : > { %v596_v27 = vpop.f32.mrb[0].mxu0  ;;  %v667_v28 = vpop.f32.mrb[0].mxu1 }
 0x280   : > { %671 = vst [vmem:[#allocation3] sm:$0xff] %v596_v27  ;;  %673 = vst [vmem:[#allocation3 + $0x10] sm:$0xff] %v667_v28  ;;  %v598_v29 = vpop.f32.mrb[1].mxu0  ;;  %v1182_v30 = vpop.f32.mrb[1].mxu1 }
 0x281   : > { %672 = vst [vmem:[#allocation3 + $0x8] sm:$0xff] %v598_v29 }
 0x282 PF: > { %v676_v19 = vld [vmem:[%s1948_s6 + $0x188] sm:$0xff]  ;;  %v679_v31 = vld [vmem:[%s1948_s6 + $0x1a0] sm:$0xff]  ;;  %v678_v34 = vld [vmem:[%s1948_s6 + $0x198] sm:$0xff]  ;;  %v1690_v37 = vmov 0.0|0.0   ;;  %v1691_v38 = vmov 0.0   ;;  %vm1692_vm2 = vmmov 0  }
 0x283   : > { %v675_v32 = vld [vmem:[%s1948_s6 + $0x180] sm:$0xff]  ;;  %v1330_v33 = vpack.c.bf16 %v679_v31, %v676_v19  ;;  %v682_v35 = vld [vmem:[%s1948_s6 + $0x1b8] sm:$0xff]  ;;  %v685_v36 = vld [vmem:[%s1948_s6 + $0x1d0] sm:$0xff]  ;;  %1362 = vmatprep.subr.bf16.mxu1 %v1690_v37  ;;  %787 = vmatprep.mubr.f32.mxu0 %v1691_v38  ;;  %s1059_s21 = sshll.u32 %s1740_s19, 7  ;;  %s927_s27 = sshll.u32 %s1954_s20, 4  ;;  %s2090_s27 = int_to_ptr.vmem [resolvable:$true] %s927_s27 }
 0x284   : > { %v1332_v39 = vpack.c.bf16 %v678_v34, %v675_v32  ;;  %v1334_v40 = vpack.c.bf16 %v685_v36, %v682_v35  ;;  %v681_v41 = vld [vmem:[%s1948_s6 + $0x1b0] sm:$0xff]  ;;  %v684_v42 = vld [vmem:[%s1948_s6 + $0x1c8] sm:$0xff]  ;;  %1215 = vmatprep.mubr.msk.f32.mxu1 %vm1692_vm2, %v1691_v38  ;;  %v691_v44 = vld [vmem:[%s1948_s6 + $0x200] sm:$0xff]  ;;  %s2088_s29 = scalar_lea.hbm %s2136_s4, %s1059_s21  ;;  %s914_s28 = scalar_lea.sflag [#allocation6], %s1933_s25 }
 0x285   : > { %v688_v43 = vld [vmem:[%s1948_s6 + $0x1e8] sm:$0xff]  ;;  %1331 = vmatprep.subr.bf16.mxu0 %v1330_v33  ;;  %v1336_v45 = vpack.c.bf16 %v684_v42, %v681_v41  ;;  %v687_v47 = vld [vmem:[%s1948_s6 + $0x1e0] sm:$0xff]  ;;  %v690_v48 = vld [vmem:[%s1948_s6 + $0x1f8] sm:$0xff]  ;;  %v870_v42 = vlaneseq  ;;  %s1598_s5 = scalar_lea.vmem %s2090_s27, 128  ;;  %s1693_s19 = smov [#allocation12]  }
 0x286   : > { %1333 = vmatpush1.bf16.msra.mxu0 %v1332_v39  ;;  %v1338_v46 = vpack.c.bf16 %v691_v44, %v688_v43  ;;  %v694_v49 = vld [vmem:[%s1948_s6 + $0x218] sm:$0xff]  ;;  %v697_v50 = vld [vmem:[%s1948_s6 + $0x230] sm:$0xff]  ;;  %v1340_v51 = vpack.c.bf16 %v690_v48, %v687_v47  ;;  %v696_v54 = vld [vmem:[%s1948_s6 + $0x228] sm:$0xff]  ;;  %p1599_p5 = scmp.ne.s32.totalorder %s2090_s27, %s1598_s5  ;;  %s1602_s30 = sshll.u32 %s1693_s19, 4  ;;  %s1603_s30 = int_to_ptr.vmem [resolvable:$false] %s1602_s30 }
 0x287   : > { %1335 = vmatprep.subr.bf16.mxu0 %v1334_v40  ;;  %v693_v52 = vld [vmem:[%s1948_s6 + $0x210] sm:$0xff]  ;;  %v1342_v53 = vpack.c.bf16 %v697_v50, %v694_v49  ;;  %v680_v56 = vld [vmem:[%s1948_s6 + $0x1a8] sm:$0xff]  ;;  %v703_v58 = vld [vmem:[%s1948_s6 + $0x260] sm:$0xff]  ;;  %v871_v43 = vshrl.u32 %v870_v42, 7  ;;  %s1604_s7 = scalar_lea.vmem %s1603_s30, 256  ;;  %p1605_p8 = scmp.lt.s32.totalorder %s2090_s27, %s1603_s30 }
 0x288   : > { %v677_v55 = vld [vmem:[%s1948_s6 + $0x190] sm:$0xff]  ;;  %v700_v57 = vld [vmem:[%s1948_s6 + $0x248] sm:$0xff]  ;;  %v683_v60 = vld [vmem:[%s1948_s6 + $0x1c0] sm:$0xff]  ;;  %v1344_v62 = vpack.c.bf16 %v696_v54, %v693_v52  ;;  %p1600_p1 = pnand %p1599_p5, %p1835_p6  ;;  %p1606_p9 = scmp.lt.s32.totalorder %s1604_s7, %s1598_s5 }
 0x289   : > { %v1363_v59 = vpack.c.bf16 %v680_v56, %v677_v55  ;;  %v686_v61 = vld [vmem:[%s1948_s6 + $0x1d8] sm:$0xff]  ;;  %v699_v63 = vld [vmem:[%s1948_s6 + $0x240] sm:$0xff]  ;;  %v1346_v1 = vpack.c.bf16 %v703_v58, %v700_v57  ;;  %v689_v3 = vld [vmem:[%s1948_s6 + $0x1f0] sm:$0xff]  ;;  %v872_v44 = vsub.s32 0, %v871_v43 }
 0x28a   : > { %1337 = vmatpush1.bf16.msra.mxu0 %v1336_v45  ;;  %v1366_v0 = vpack.c.bf16 %v686_v61, %v683_v60  ;;  %v702_v2 = vld [vmem:[%s1948_s6 + $0x258] sm:$0xff]  ;;  %v692_v5 = vld [vmem:[%s1948_s6 + $0x208] sm:$0xff]  ;;  %v709_v7 = vld [vmem:[%s1948_s6 + $0x290] sm:$0xff]  ;;  %p1601_p4 = pneg %p1600_p1  ;;  %p1607_p0 = por %p1606_p9, %p1605_p8 }
 0x28b   : > { %1339 = vmatprep.subr.bf16.mxu0 %v1338_v46  ;;  %1364 = vmatpush3.bf16.msra.mxu1 %v1363_v59  ;;  %v706_v6 = vld [vmem:[%s1948_s6 + $0x278] sm:$0xff]  ;;  %v1348_v8 = vpack.c.bf16 %v702_v2, %v699_v63  ;;  %v705_v9 = vld [vmem:[%s1948_s6 + $0x270] sm:$0xff]  ;;  %v1369_v10 = vpack.c.bf16 %v692_v5, %v689_v3  ;;  %v708_v12 = vld [vmem:[%s1948_s6 + $0x288] sm:$0xff] }
 0x28c   : > { %1365 = vmatprep.subr.bf16.mxu1 %v1690_v37  ;;  %v1350_v11 = vpack.c.bf16 %v709_v7, %v706_v6  ;;  %v695_v13 = vld [vmem:[%s1948_s6 + $0x220] sm:$0xff]  ;;  %v698_v14 = vld [vmem:[%s1948_s6 + $0x238] sm:$0xff]  ;;  %v712_v15 = vld [vmem:[%s1948_s6 + $0x2a8] sm:$0xff]  ;;  %v1352_v16 = vpack.c.bf16 %v708_v12, %v705_v9  ;;  %p1608_p2 = pnand %p1607_p0, %p1601_p4 }
 0x28d   : > { %v715_v4 = vld [vmem:[%s1948_s6 + $0x2c0] sm:$0xff]  ;;  %v1372_v18 = vpack.c.bf16 %v698_v14, %v695_v13  ;;  %v714_v21 = vld [vmem:[%s1948_s6 + $0x2b8] sm:$0xff]  ;;  %v701_v22 = vld [vmem:[%s1948_s6 + $0x250] sm:$0xff] }
 0x28e   : > { %1341 = vmatpush1.bf16.msra.mxu0 %v1340_v51  ;;  %v711_v17 = vld [vmem:[%s1948_s6 + $0x2a0] sm:$0xff]  ;;  %v1354_v20 = vpack.c.bf16 %v715_v4, %v712_v15  ;;  %v704_v23 = vld [vmem:[%s1948_s6 + $0x268] sm:$0xff]  ;;  %v718_v24 = vld [vmem:[%s1948_s6 + $0x2d8] sm:$0xff] }
 0x28f   : > { %1343 = vmatprep.subr.bf16.mxu0 %v1342_v53  ;;  %1367 = vmatpush3.bf16.msra.mxu1 %v1366_v0  ;;  %v721_v25 = vld [vmem:[%s1948_s6 + $0x2f0] sm:$0xff]  ;;  %v1356_v26 = vpack.c.bf16 %v714_v21, %v711_v17  ;;  %v1375_v28 = vpack.c.bf16 %v704_v23, %v701_v22  ;;  %v720_v30 = vld [vmem:[%s1948_s6 + $0x2e8] sm:$0xff]  ;;  %v707_v19 = vld [vmem:[%s1948_s6 + $0x280] sm:$0xff] }
 0x290   : > { %1368 = vmatprep.subr.bf16.mxu1 %v1690_v37  ;;  %v717_v27 = vld [vmem:[%s1948_s6 + $0x2d0] sm:$0xff]  ;;  %v1358_v29 = vpack.c.bf16 %v721_v25, %v718_v24  ;;  %v710_v31 = vld [vmem:[%s1948_s6 + $0x298] sm:$0xff]  ;;  %v716_v35 = vld [vmem:[%s1948_s6 + $0x2c8] sm:$0xff] }
 0x291   : > { %v1360_v32 = vpack.c.bf16 %v720_v30, %v717_v27  ;;  %v1378_v33 = vpack.c.bf16 %v710_v31, %v707_v19  ;;  %v713_v34 = vld [vmem:[%s1948_s6 + $0x2b0] sm:$0xff]  ;;  %v719_v39 = vld [vmem:[%s1948_s6 + $0x2e0] sm:$0xff]  ;;  %v722_v40 = vld [vmem:[%s1948_s6 + $0x2f8] sm:$0xff] }
 0x292   : > { %1345 = vmatpush1.bf16.msra.mxu0 %v1344_v62  ;;  %v674_v36 = vld [vmem:[%s1936_s11] sm:$0xff]  ;;  %v1381_v38 = vpack.c.bf16 %v716_v35, %v713_v34  ;;  %v1384_v41 = vpack.c.bf16 %v722_v40, %v719_v39  ;;  %v865_v47 = vld [vmem:[%s1948_s6 + $0x308] sm:$0x3]  ;;  %v901_v62 = vsub.s32 1, %v871_v43 }
 0x293   : > { %1347 = vmatprep.subr.bf16.mxu0 %v1346_v1  ;;  %1370 = vmatpush3.bf16.msra.mxu1 %v1369_v10  ;;  %v864_v45 = vld [vmem:[%s1948_s6 + $0x300] sm:$0x3]  ;;  %v867_v48 = vld [vmem:[#allocation3] sm:$0xff]  ;;  %v877_v49 = vrot.slane %v865_v47, %v872_v44 }
 0x294   : > { %1371 = vmatprep.subr.bf16.mxu1 %v1690_v37  ;;  %v873_v46 = vrot.slane %v864_v45, %v872_v44  ;;  %v868_v51 = vld [vmem:[#allocation3 + $0x8] sm:$0xff]  ;;  %v866_v63 = vld [vmem:[%s1948_s6 + $0x310] sm:$0x3]  ;;  %v869_v3 = vld [vmem:[#allocation3 + $0x10] sm:$0xff] }
 0x295   : > { %v883_v53 = vadd.f32 %v877_v49, %v868_v51  ;;  %v902_v0 = vrot.slane %v866_v63, %v901_v62  ;;  %v881_v2 = vrot.slane %v866_v63, %v872_v44 }
 0x296   : > { %1349 = vmatpush1.bf16.msra.mxu0 %v1348_v8  ;;  %v882_v50 = vadd.f32 %v873_v46, %v867_v48 }
 0x297   : > { %1351 = vmatprep.subr.bf16.mxu0 %v1350_v11  ;;  %1373 = vmatpush3.bf16.msra.mxu1 %v1372_v18  ;;  %v884_v7 = vadd.f32 %v881_v2, %v869_v3 }
 0x298   : > { %1374 = vmatprep.subr.bf16.mxu1 %v1690_v37 }
 0x29a   : > { %1353 = vmatpush1.bf16.msra.mxu0 %v1352_v16 }
 0x29b   : > { %1355 = vmatprep.subr.bf16.mxu0 %v1354_v20  ;;  %1376 = vmatpush3.bf16.msra.mxu1 %v1375_v28 }
 0x29c   : > { %1377 = vmatprep.subr.bf16.mxu1 %v1690_v37 }
 0x29e   : > { %1357 = vmatpush1.bf16.msra.mxu0 %v1356_v26 }
 0x29f   : > { %1359 = vmatprep.subr.bf16.mxu0 %v1358_v29  ;;  %1379 = vmatpush3.bf16.msra.mxu1 %v1378_v33 }
 0x2a0   : > { %1380 = vmatprep.subr.bf16.mxu1 %v1690_v37 }
 0x2a2   : > { %1361 = vmatpush1.bf16.msra.mxu0 %v1360_v32 }
 0x2a3   : > { %1382 = vmatpush3.bf16.msra.mxu1 %v1381_v38 }
 0x2a4   : > { %1383 = vmatprep.subr.bf16.mxu1 %v1690_v37 }
 0x2a5   : > { %788 = vmatmul.mubr.f32.vlgmr.msra.gmra.mrb[0].mxu0 %v674_v36 }
 0x2a7   : > { %1385 = vmatpush3.bf16.msra.mxu1 %v1384_v41 }
 0x2aa   : > { %1216 = vmatmul.mubr.f32.vlgmr.msra.gmra.mrb[0].mxu1 %v674_v36 }
 0x378   : > { %v789_v52 = vpop.f32.mrb[0].mxu0 }
 0x379   : > { %v885_v54 = vadd.f32 %v882_v50, %v789_v52  ;;  %v791_v55 = vpop.f32.mrb[1].mxu0 }
 0x37a   : > { %v892_v57 = vadd.f32 %v883_v53, %v791_v55 }
 0x37b   : > { %v1056_v56 = vmul.f32 -1.442695, %v885_v54 }
 0x37c   : > { %v1057_v37 = vmul.f32 -1.442695, %v892_v57 }
 0x37d   : > { %1472 = vpow2.f32 %v1056_v56  ;;  %v860_v58 = vpop.f32.mrb[0].mxu1 }
 0x37e   : > { %v1217_v59 = vpop.f32.mrb[1].mxu1  ;;  %1474 = vpow2.f32 %v1057_v37  ;;  %v903_v6 = vadd.f32 %v902_v0, %v860_v58 }
 0x387   : > { %v1473_v60 = vpop.eup %1472 }
 0x388   : > { %v889_v61 = vadd.f32 1.0, %v1473_v60  ;;  %v1475_v1 = vpop.eup %1474 }
 0x389   : > { %v896_v5 = vadd.f32 1.0, %v1475_v1 }
 0x38a   : > { %1476 = vrcp.f32 %v889_v61 }
 0x38b   : > { %1478 = vrcp.f32 %v896_v5 }
 0x394   : > { %v1477_v8 = vpop.eup %1476 }
 0x395   : > { %v904_v9 = vmul.f32 %v1477_v8, %v903_v6  ;;  %v1479_v11 = vpop.eup %1478 }
 0x396   : > { %v907_v12 = vsub.f32 1.0, %v1479_v11  ;;  %v909_v15 = vmul.f32 %v1479_v11, %v674_v36 }
 0x397   : > { %v905_v10 = vadd.f32 %v904_v9, %v884_v7 }
 0x399   : > { %1480 = vtanh.f32 %v905_v10 }
 0x3a3   : > { %v1481_v13 = vpop.eup %1480 }
 0x3a4   : > { %v908_v14 = vmul.f32 %v1481_v13, %v907_v12 }
 0x3a6   : > { %v910_v4 = vadd.f32 %v909_v15, %v908_v14 }
 0x3a8   : > { %911 = vst [vmem:[%s1954_s20] sm:$0xff] %v910_v4  ;;  %912 = vst [vmem:[#allocation2] sm:$0xff] %v910_v4 }
 0x3a9   : > { %1611 = shalt.err (!%p1608_p2)
}
 0x3aa   : > { %s1612_s25 = scalar_lea.hbm %s2088_s29, 128  ;;  %s1616_s11 = scalar_lea.hbm %s2136_s4, 384 }
 0x3ab   : > { %p1613_p12 = scmp.ne.s32.totalorder %s2088_s29, %s1612_s25  ;;  %p1617_p7 = scmp.lt.u32.totalorder %s2088_s29, %s2136_s4 }
 0x3ac   : > { %p1618_p10 = scmp.lt.u32.totalorder %s1616_s11, %s1612_s25  ;;  %p1620_p5 = scmp.lt.u32.totalorder %s1612_s25, %s2088_s29 }
 0x3ad   : > { %p1614_p11 = pnand %p1613_p12, %p1835_p6 }
 0x3ae   : > { %p1619_p13 = por %p1618_p10, %p1617_p7 }
 0x3af   : > { %p1615_p3 = pneg %p1614_p11 }
 0x3b0   : > { %p1621_p1 = por %p1620_p5, %p1619_p13 }
 0x3b2   : > { %p1622_p4 = pnand %p1621_p1, %p1615_p3 }
 0x3b4   : > { %1625 = shalt.err (!%p1622_p4)
}
 0x3b5   : > { %1401 = dma.vmem_to_hbm [thread:$0]  (%p1835_p6), %s2090_s27, 128, %s2088_s29, %s914_s28  }
 0x3b6 PF: > { %p1426_p8 = scmp.ge.s32.totalorder %s1676_s18, 2  ;;  %s939_s6 = sand.u32 1, %s1664_s15  }
 0x3b7   : > { %p2156_p9 = scmp.ne.s32.totalorder %s2142_s22, 0  ;;  %s940_s20 = scalar_lea.sflag [#allocation6], %s939_s6 }
 0x3b9   : > { %p1418_p0 = pnand %p1426_p8, %p2156_p9 }
 0x3bb   : > { %1659 = dma.done.wait (!%p1418_p0), %s940_s20, 128  }
 0x3bc   : > { %1661 = vsyncadd (!%p1418_p0), %s940_s20, 4294967168  ;;  %p21_p2 = scmp.ge.s32.totalorder %s1825_s9, 5   ;;  %s2157_s15 = smov %s1668_s16 }
 0x3bd   : > { %s2158_s16 = smov %s1672_s17  ;;  %s2159_s17 = smov %s1841_s14 }
 0x3be   : > { %s2160_s18 = smov %s1825_s9  ;;  %23 = sbr.rel (!%p21_p2) target bundleno = 8 (0x8), region = 111 }
 0x3c5   :  { %945 = vsyncpa [#allocation5], 1 }
 0x3c6   :  { %947 = vsyncpa [#allocation5 + $0x1], 1 }
 0x3c7   :  { %948 = vsyncpa [#allocation8], 1 }
 0x3c8   :  { %950 = vsyncpa [#allocation8 + $0x1], 1 }
 0x3c9   :  { %951 = vsyncpa [#allocation11], 1 }
 0x3ca   :  { %953 = vsyncpa [#allocation11 + $0x1], 1 }
 0x3cb   :  { %954 = vsyncpa [#allocation6], 1 }
 0x3cc   :  { %956 = vsyncpa [#allocation6 + $0x1], 1 }

</bundles_post_ra>
